<compile_context>
chip_gen: v6e
topology: v6e:2x2x1
jax: 0.10.0
libtpu: 0.0.40
codegen_flags: <defaults>
</compile_context>

<pallas_src>
import functools
import math

import jax
import jax.numpy as jnp
from jax import lax
from jax.experimental import pallas as pl
from jax.experimental.pallas import tpu as pltpu


# ---------------------------------------------------------------------------
# Kernels
# ---------------------------------------------------------------------------

def _project_kernel(x_ref, w_ref, wh_ref, s1_ref, s2t_ref, *, nhid, nh):
    """One row tile of: [Wh(all heads) | s1 | s2] = x @ W_ext (single MXU matmul).

    Outputs: wh (TQ, nhid) in the MXU dtype (key-side features), s1 (TQ, nh)
    f32 (query-side score halves), s2T (nh, TQ) f32 (key-side halves,
    transposed once here so the attention kernels never transpose per head).
    """
    res = jnp.dot(x_ref[...], w_ref[...], preferred_element_type=jnp.float32)
    wh_ref[...] = res[:, :nhid].astype(wh_ref.dtype)
    s1_ref[...] = res[:, nhid:nhid + nh]
    s2t_ref[...] = jnp.transpose(res[:, nhid + nh:])


def _heads_attn_kernel(adj_ref, s1_ref, s2t_ref, wh_ref, wout_ref,
                       whout_ref, s1o_ref, s2to_ref, *,
                       nheads, hidden, fout, alpha):
    """4-head masked attention for one query-row tile, fused with the
    output-layer projection: emits [Wh_out | s1_out | s2T_out] directly, so
    h_cat never round-trips through HBM and no concatenate slab is built."""
    mask = adj_ref[...] > 0                         # (TQ, N) computed ONCE, reused by all heads
    s1 = s1_ref[...]                                # (TQ, nheads)      f32
    s2t = s2t_ref[...]                              # (nheads, N)       f32
    wh = wh_ref[...]                                # (N, nheads*hidden) mxu dtype (key side)
    wout = wout_ref[...]                            # (nheads*hidden, fout+2) f32

    res = None
    for hi in range(nheads):                        # static unroll (nheads = 4)
        e = s1[:, hi:hi + 1] + s2t[hi:hi + 1, :]    # (TQ, N) via broadcast
        e = jnp.where(e > 0, e, alpha * e)          # LeakyReLU
        att = jnp.where(mask, e, -9.0e15)           # scalar fill, no N^2 constant
        m = jnp.max(att, axis=1, keepdims=True)
        p = jnp.exp(att - m)
        denom = jnp.sum(p, axis=1, keepdims=True)
        # Exact reciprocal on the (TQ,1) denominator (cheap), then a broadcast mul.
        p = (p * pl.reciprocal(denom, approx=False)).astype(wh.dtype)
        hp = jnp.dot(p, wh[:, hi * hidden:(hi + 1) * hidden],
                     preferred_element_type=jnp.float32)          # (TQ, hidden)
        hp = jnp.where(hp > 0, hp, jnp.expm1(hp))                 # F.elu (concat=True)
        # Fold this head's slice of h_cat straight into the output projection.
        contrib = jnp.dot(hp, wout[hi * hidden:(hi + 1) * hidden, :],
                          preferred_element_type=jnp.float32)     # (TQ, fout+2)
        res = contrib if res is None else res + contrib

    whout_ref[...] = res[:, :fout].astype(whout_ref.dtype)
    s1o_ref[...] = res[:, fout:fout + 1]
    s2to_ref[...] = jnp.transpose(res[:, fout + 1:fout + 2])


def _out_attn_kernel(adj_ref, s1_ref, s2t_ref, wh_ref, y_ref, *, alpha):
    """Output GAT block + elu / L2-normalize / relu tail for one row tile."""
    mask = adj_ref[...] > 0
    e = s1_ref[...] + s2t_ref[...]                  # (TQ,1)+(1,N) -> (TQ,N)
    e = jnp.where(e > 0, e, alpha * e)              # LeakyReLU
    att = jnp.where(mask, e, -9.0e15)
    m = jnp.max(att, axis=1, keepdims=True)
    p = jnp.exp(att - m)
    denom = jnp.sum(p, axis=1, keepdims=True)
    p = (p * pl.reciprocal(denom, approx=False)).astype(wh_ref.dtype)
    y = jnp.dot(p, wh_ref[...], preferred_element_type=jnp.float32)   # (TQ, fout)
    # F.elu -> F.normalize(dim=-1, p=2, eps=1e-12) -> F.relu
    y = jnp.where(y > 0, y, jnp.expm1(y))
    sumsq = jnp.sum(y * y, axis=-1, keepdims=True)
    y = y * lax.rsqrt(jnp.maximum(sumsq, 1e-24))    # == 1 / max(||y||, 1e-12)
    y_ref[...] = jnp.maximum(y, 0.0)


# ---------------------------------------------------------------------------
# Wrapper: tiling, parameter packing, pallas_call plumbing
# ---------------------------------------------------------------------------

def _round_up(x, m):
    return ((x + m - 1) // m) * m


def _vmem_capacity_bytes():
    try:
        return int(pltpu.get_tpu_info().vmem_capacity_bytes)
    except Exception:
        return 64 * 1024 * 1024            # conservative (v7x-sized) fallback


def _default_row_tile():
    # 128 MiB VMEM parts (v5e/v6e) -> TQ=512; 64 MiB parts (v7x) -> TQ=256.
    return 512 if _vmem_capacity_bytes() >= (100 << 20) else 256


def _vmem_limit_bytes():
    return int(min(_vmem_capacity_bytes() * 3 // 4, 96 * 1024 * 1024))


def _pick_tiling(n, row_tile):
    """Return (n_pad, tq).  Multi-tile rows use a 128-multiple tile so the
    transposed (nh, TQ) score blocks stay lane-legal."""
    if row_tile is None:
        row_tile = _default_row_tile()
    if n <= row_tile:
        tq = max(8, _round_up(n, 8))
        return tq, tq                       # single row tile
    assert row_tile % 128 == 0, "row_tile must be a multiple of 128 when tiling"
    return _round_up(n, row_tile), row_tile


def _pack_params(params):
    """Stack head projections + fold the attention vectors into them.

    w_ext   : (F_in, nheads*hidden + 2*nheads) = [W_0..W_3 | W_h@a_h[:H] | W_h@a_h[H:]]
    wout_ext: (nheads*hidden, F_out + 2)       = [W_out | W_out@a[:F] | W_out@a[F:]]
    """
    heads = params["heads"]
    nheads = len(heads)
    hidden = heads[0][0].shape[1]
    fout = params["out_W"].shape[1]

    w_cols = [w for (w, _) in heads]
    s1_cols = [w @ a[:hidden] for (w, a) in heads]
    s2_cols = [w @ a[hidden:] for (w, a) in heads]
    w_ext = jnp.concatenate(w_cols + s1_cols + s2_cols, axis=1)

    wout_ext = jnp.concatenate(
        [params["out_W"],
         params["out_W"] @ params["out_a"][:fout],
         params["out_W"] @ params["out_a"][fout:]], axis=1)
    return w_ext.astype(jnp.float32), wout_ext.astype(jnp.float32), nheads, hidden, fout


def batched_gat_forward(params, x, adj, *, alpha=0.2, row_tile=None,
                        mxu_dtype=jnp.bfloat16):
    """BatchedGat.forward (eval mode) as three row-tiled Pallas TPU kernels.

    mxu_dtype: operand dtype for the attention aggregation matmuls (bf16 per
    v6e/v7x review; accumulation is always f32).  Use jnp.float32 for strict
    full-precision parity.
    """
    if x.ndim == 3:
        x = x.reshape((x.shape[1], x.shape[2]))
        adj = adj[0]
    # F.dropout on x / attention -> identity in eval mode.
    x = x.astype(jnp.float32)

    # adj: only the sign matters -> int8 stream (4x less HBM/VMEM than f32).
    if jnp.issubdtype(adj.dtype, jnp.floating):
        adj_i8 = (adj > 0).astype(jnp.int8)
    else:
        adj_i8 = adj.astype(jnp.int8)

    w_ext, wout_ext, nheads, hidden, fout = _pack_params(params)
    nh, nhid = nheads, nheads * hidden
    n, fin = x.shape

    n_pad, tq = _pick_tiling(n, row_tile)
    if n_pad != n:
        # Padded key columns are adj==0 -> fully masked -> contribute exp(-inf)=0.
        x = jnp.pad(x, ((0, n_pad - n), (0, 0)))
        adj_i8 = jnp.pad(adj_i8, ((0, n_pad - n), (0, n_pad - n)))
    grid = (n_pad // tq,)

    cparams = pltpu.CompilerParams(
        dimension_semantics=("parallel",),          # v7x: split row tiles across both TCs
        vmem_limit_bytes=_vmem_limit_bytes())

    # ---- Pass 1: projections + score halves for all 4 heads (one matmul) ----
    wh, s1, s2t = pl.pallas_call(
        functools.partial(_project_kernel, nhid=nhid, nh=nh),
        out_shape=(jax.ShapeDtypeStruct((n_pad, nhid), mxu_dtype),
                   jax.ShapeDtypeStruct((n_pad, nh), jnp.float32),
                   jax.ShapeDtypeStruct((nh, n_pad), jnp.float32)),
        grid=grid,
        in_specs=[pl.BlockSpec((tq, fin), lambda i: (i, 0)),
                  pl.BlockSpec((fin, nhid + 2 * nh), lambda i: (0, 0))],
        out_specs=(pl.BlockSpec((tq, nhid), lambda i: (i, 0)),
                   pl.BlockSpec((tq, nh), lambda i: (i, 0)),
                   pl.BlockSpec((nh, tq), lambda i: (0, i))),
        compiler_params=cparams,
        cost_estimate=pl.CostEstimate(
            flops=2 * n_pad * fin * (nhid + 2 * nh),
            transcendentals=0,
            bytes_accessed=4 * (n_pad * fin + fin * (nhid + 2 * nh))
                           + 2 * n_pad * nhid + 4 * n_pad * 2 * nh),
    )(x, w_ext)

    # ---- Pass 2: 4-head attention (adj tile DMA'd once, mask reused) fused ----
    # ---- with the output-layer projection (h_cat never hits HBM).          ----
    whout, s1o, s2to = pl.pallas_call(
        functools.partial(_heads_attn_kernel, nheads=nh, hidden=hidden,
                          fout=fout, alpha=alpha),
        out_shape=(jax.ShapeDtypeStruct((n_pad, fout), mxu_dtype),
                   jax.ShapeDtypeStruct((n_pad, 1), jnp.float32),
                   jax.ShapeDtypeStruct((1, n_pad), jnp.float32)),
        grid=grid,
        in_specs=[pl.BlockSpec((tq, n_pad), lambda i: (i, 0)),        # adj rows (int8, streamed)
                  pl.BlockSpec((tq, nh), lambda i: (i, 0)),           # query-side score halves
                  pl.BlockSpec((nh, n_pad), lambda i: (0, 0)),        # key-side halves (resident)
                  pl.BlockSpec((n_pad, nhid), lambda i: (0, 0)),      # key-side Wh (resident)
                  pl.BlockSpec((nhid, fout + 2), lambda i: (0, 0))],  # [W_out | W_out@a]
        out_specs=(pl.BlockSpec((tq, fout), lambda i: (i, 0)),
                   pl.BlockSpec((tq, 1), lambda i: (i, 0)),
                   pl.BlockSpec((1, tq), lambda i: (0, i))),
        compiler_params=cparams,
        cost_estimate=pl.CostEstimate(
            flops=2 * nh * n_pad * n_pad * hidden + 2 * n_pad * nhid * (fout + 2),
            transcendentals=nh * n_pad * n_pad,
            bytes_accessed=n_pad * n_pad + 2 * n_pad * nhid
                           + 4 * n_pad * (2 * nh + fout + 2)),
    )(adj_i8, s1, s2t, wh, wout_ext)

    # ---- Pass 3: output GAT block + elu / L2-normalize / relu tail ----
    y = pl.pallas_call(
        functools.partial(_out_attn_kernel, alpha=alpha),
        out_shape=jax.ShapeDtypeStruct((n_pad, fout), jnp.float32),
        grid=grid,
        in_specs=[pl.BlockSpec((tq, n_pad), lambda i: (i, 0)),        # adj rows (int8, streamed)
                  pl.BlockSpec((tq, 1), lambda i: (i, 0)),
                  pl.BlockSpec((1, n_pad), lambda i: (0, 0)),
                  pl.BlockSpec((n_pad, fout), lambda i: (0, 0))],
        out_specs=pl.BlockSpec((tq, fout), lambda i: (i, 0)),
        compiler_params=cparams,
        cost_estimate=pl.CostEstimate(
            flops=2 * n_pad * n_pad * fout,
            transcendentals=n_pad * n_pad,
            bytes_accessed=n_pad * n_pad + 2 * n_pad * fout + 8 * n_pad * fout),
    )(adj_i8, s1o, s2to, whout)

    return y[:n].reshape((1, n, fout))


# ---------------------------------------------------------------------------
# Pure-JAX reference (mirrors the PyTorch module in eval mode) for validation
# ---------------------------------------------------------------------------

def _reference_forward(params, x, adj, alpha=0.2, mxu_dtype=jnp.bfloat16):
    if x.ndim == 3:
        x = x[0]
        adj = adj[0]

    def gat(h, W, a, concat):
        Wh = h @ W
        fo = W.shape[1]
        e = Wh @ a[:fo] + (Wh @ a[fo:]).T
        e = jnp.where(e > 0, e, alpha * e)
        att = jnp.where(adj > 0, e, -9.0e15)
        att = jax.nn.softmax(att, axis=1)
        hp = jnp.dot(att.astype(mxu_dtype), Wh.astype(mxu_dtype),
                     preferred_element_type=jnp.float32)
        return jnp.where(hp > 0, hp, jnp.expm1(hp)) if concat else hp

    h = jnp.concatenate([gat(x, W, a, True) for (W, a) in params["heads"]], axis=1)
    y = gat(h, params["out_W"], params["out_a"], False)
    y = jnp.where(y > 0, y, jnp.expm1(y))
    y = y / jnp.maximum(jnp.linalg.norm(y, axis=-1, keepdims=True), 1e-12)
    y = jnp.maximum(y, 0.0)
    return y.reshape((1,) + y.shape)


# ---------------------------------------------------------------------------
# Deterministic parameter init (matches nn.init.xavier_uniform_ with gain=1.414)
# ---------------------------------------------------------------------------

def xavier_uniform(key, shape, gain=1.414):
    fan_in, fan_out = shape[0], shape[1]
    bound = gain * math.sqrt(6.0 / (fan_in + fan_out))
    return jax.random.uniform(key, shape, jnp.float32, -bound, bound)


def init_batched_gat_params(key, infeat, outfeat, nheads=4, hidden=32):
    keys = jax.random.split(key, 2 * nheads + 2)
    heads = []
    for i in range(nheads):
        w = xavier_uniform(keys[2 * i], (infeat, hidden))
        a = xavier_uniform(keys[2 * i + 1], (2 * hidden, 1))
        heads.append((w, a))
    out_w = xavier_uniform(keys[-2], (hidden * nheads, outfeat))
    out_a = xavier_uniform(keys[-1], (2 * outfeat, 1))
    return {"heads": heads, "out_W": out_w, "out_a": out_a}


# ---------------------------------------------------------------------------
# Demo
# ---------------------------------------------------------------------------

if __name__ == "__main__":
    N, INFEAT, OUTFEAT, NHEADS = 200, 16, 8, 4

    root = jax.random.PRNGKey(0)
    k_param, k_x, k_adj = jax.random.split(root, 3)
    params = init_batched_gat_params(k_param, INFEAT, OUTFEAT, nheads=NHEADS)

    # Batched (dim==3) inputs, like the PyTorch module expects.
    x = jax.random.normal(k_x, (1, N, INFEAT), dtype=jnp.float32)
    adj_rand = (jax.random.uniform(k_adj, (N, N)) > 0.5).astype(jnp.float32)
    adj = jnp.maximum(adj_rand, jnp.eye(N, dtype=jnp.float32))   # self loops (avoids
    adj = adj.reshape((1, N, N))                                 # empty-row softmax, as in ref)

    # row_tile=128 exercises the multi-tile grid and the row-padding path
    # (N=200 -> padded 256, grid of 2 "parallel" row tiles).
    out = batched_gat_forward(params, x, adj, row_tile=128)
    out = jax.block_until_ready(out)

    assert out.shape == (1, N, OUTFEAT), out.shape
    assert bool(jnp.all(jnp.isfinite(out)))

    # Pure-JAX reference (same bf16 MXU operand precision) — checks tiling,
    # padding, weight-folding and softmax plumbing end to end.
    ref = _reference_forward(params, x, adj)
    max_err = float(jnp.max(jnp.abs(out - ref)))
    assert bool(jnp.allclose(out, ref, rtol=1e-2, atol=1e-2)), f"max |err| = {max_err}"

    print("KERNEL_OK")
</pallas_src>

<mosaic_0001>
module attributes {stable_mosaic.version = 11 : i64} {
  func.func @_project_kernel(%arg0: i32, %arg1: memref<128x16xf32, #tpu.memory_space<vmem>>, %arg2: memref<16x136xf32, #tpu.memory_space<vmem>>, %arg3: memref<128x128xbf16, #tpu.memory_space<vmem>>, %arg4: memref<128x4xf32, #tpu.memory_space<vmem>>, %arg5: memref<4x128xf32, #tpu.memory_space<vmem>>) attributes {dimension_semantics = [#tpu.dimension_semantics<parallel>], iteration_bounds = array<i64: 2>, scalar_prefetch = 0 : i64, scratch_operands = 0 : i64, tpu.core_type = #tpu.core_type<tc>, window_params = [{transform_indices = @transform_0, window_bounds = array<i64: 128, 16>}, {pipeline_mode = #tpu.pipeline_mode<synchronous>, transform_indices = @transform_1, window_bounds = array<i64: 16, 136>}, {transform_indices = @transform_2, window_bounds = array<i64: 128, 128>}, {transform_indices = @transform_3, window_bounds = array<i64: 128, 4>}, {transform_indices = @transform_4, window_bounds = array<i64: 4, 128>}]} {
    %c0 = arith.constant 0 : index
    %c0_0 = arith.constant 0 : index
    %0 = vector.load %arg1[%c0, %c0_0] : memref<128x16xf32, #tpu.memory_space<vmem>>, vector<128x16xf32>
    %c0_1 = arith.constant 0 : index
    %c0_2 = arith.constant 0 : index
    %1 = vector.load %arg2[%c0_1, %c0_2] : memref<16x136xf32, #tpu.memory_space<vmem>>, vector<16x136xf32>
    %cst = arith.constant dense<0.000000e+00> : vector<128x136xf32>
    %2 = tpu.matmul %0, %1, %cst {dimension_numbers = #tpu.dot_dimension_numbers<[1], [0], [0], [1], [0, 0, 1, 1], [], []>} : vector<128x16xf32>, vector<16x136xf32>, vector<128x136xf32> -> vector<128x136xf32>
    %3 = vector.extract_strided_slice %2 {offsets = [0, 0], sizes = [128, 128], strides = [1, 1]} : vector<128x136xf32> to vector<128x128xf32>
    %4 = arith.truncf %3 : vector<128x128xf32> to vector<128x128xbf16>
    %c0_3 = arith.constant 0 : index
    %c0_4 = arith.constant 0 : index
    %5 = vector.load %arg3[%c0_3, %c0_4] : memref<128x128xbf16, #tpu.memory_space<vmem>>, vector<128x128xbf16>
    tpu.vector_store %arg3[%c0_3, %c0_4], %4 {strides = array<i32>} : memref<128x128xbf16, #tpu.memory_space<vmem>>, vector<128x128xbf16>,
    %6 = vector.extract_strided_slice %2 {offsets = [0, 128], sizes = [128, 4], strides = [1, 1]} : vector<128x136xf32> to vector<128x4xf32>
    %c0_5 = arith.constant 0 : index
    %c0_6 = arith.constant 0 : index
    %7 = vector.load %arg4[%c0_5, %c0_6] : memref<128x4xf32, #tpu.memory_space<vmem>>, vector<128x4xf32>
    tpu.vector_store %arg4[%c0_5, %c0_6], %6 {strides = array<i32>} : memref<128x4xf32, #tpu.memory_space<vmem>>, vector<128x4xf32>,
    %8 = vector.extract_strided_slice %2 {offsets = [0, 132], sizes = [128, 4], strides = [1, 1]} : vector<128x136xf32> to vector<128x4xf32>
    %9 = tpu.transpose %8, [1, 0] : vector<128x4xf32> -> vector<4x128xf32>
    %c0_7 = arith.constant 0 : index
    %c0_8 = arith.constant 0 : index
    %10 = vector.load %arg5[%c0_7, %c0_8] : memref<4x128xf32, #tpu.memory_space<vmem>>, vector<4x128xf32>
    tpu.vector_store %arg5[%c0_7, %c0_8], %9 {strides = array<i32>} : memref<4x128xf32, #tpu.memory_space<vmem>>, vector<4x128xf32>,
    return
  }
  func.func @transform_0(%arg0: i32) -> (i32, i32) {
    %c0_i32 = arith.constant 0 : i32
    %c0_i32_0 = arith.constant 0 : i32
    return %arg0, %c0_i32 : i32, i32
  }
  func.func @transform_1(%arg0: i32) -> (i32, i32) {
    %c0_i32 = arith.constant 0 : i32
    %c0_i32_0 = arith.constant 0 : i32
    %c0_i32_1 = arith.constant 0 : i32
    return %c0_i32, %c0_i32_0 : i32, i32
  }
  func.func @transform_2(%arg0: i32) -> (i32, i32) {
    %c0_i32 = arith.constant 0 : i32
    %c0_i32_0 = arith.constant 0 : i32
    return %arg0, %c0_i32 : i32, i32
  }
  func.func @transform_3(%arg0: i32) -> (i32, i32) {
    %c0_i32 = arith.constant 0 : i32
    %c0_i32_0 = arith.constant 0 : i32
    return %arg0, %c0_i32 : i32, i32
  }
  func.func @transform_4(%arg0: i32) -> (i32, i32) {
    %c0_i32 = arith.constant 0 : i32
    %c0_i32_0 = arith.constant 0 : i32
    return %c0_i32, %arg0 : i32, i32
  }
}

</mosaic_0001>

<bundles_post_ra>
// kernel: tpu_custom_call.1
= control target key start
LH: loop header
LB: loop body
LE: loop exit
PB: predicated region body
PF: predicated region fallthrough
CT: control target
= control target key end

     0   :  { %10 = vsyncpa [#allocation3], 0  ;;  %s1344_s0 = inlined_call_operand.vmem [shape: f32[256,16], index: 0, kind: input, shape index: {}]   ;;  %s1345_s1 = inlined_call_operand.vmem [shape: f32[16,136], index: 1, kind: input, shape index: {}]   ;;  %s1346_s2 = inlined_call_operand.hbm [shape: bf16[256,128], index: 2, kind: output, shape index: {0}]   ;;  %s1347_s3 = inlined_call_operand.vmem [shape: f32[256,4], index: 3, kind: output, shape index: {1}]   ;;  %s1348_s4 = inlined_call_operand.hbm [shape: f32[4,256], index: 4, kind: output, shape index: {2}]  }
   0x1   :  { %12 = vsyncpa [#allocation3 + $0x1], 0 }
   0x2   :  { %13 = vsyncpa [#allocation5], 0 }
   0x3   :  { %15 = vsyncpa [#allocation5 + $0x1], 0  ;;  %s1095_s15 = smov 0   ;;  %s1097_s16 = smov 0  }
   0x4   :  { %s1099_s17 = smov 0   ;;  %s1101_s18 = smov 0  }
   0x5 LB: > { %s1116_s19 = sadd.s32 4294967295, %s1062_s18   ;;  %s807_s20 = sadd.s32 4294967294, %s1062_s18   ;;  %s1062_s18 = sphi %s1101_s18, %s1354_s18   ;;  %s1058_s17 = sphi %s1099_s17, %s1353_s17   ;;  %s1054_s16 = sphi %s1097_s16, %s1352_s16   ;;  %s1050_s15 = sphi %s1095_s15, %s1351_s15  }
   0x6   : > { %s1120_s21 = sadd.s32 1, %s1062_s18   ;;  %s75_s22 = sadd.s32 1, %s1058_s17 }
   0x7   : > { %s72_s23 = ssub.s32 %s1062_s18, %s1120_s21  ;;  %p85_p0 = scmp.ne.s32.totalorder %s1058_s17, %s1054_s16 }
   0x8   : > { %p73_p1 = scmp.eq.s32.totalorder %s72_s23, 0  ;;  %p86_p2 = scmp.eq.s32.totalorder %s1116_s19, 1 }
   0x9   : > { %p91_p3 = scmp.ne.s32.totalorder %s1054_s16, %s1050_s15  ;;  %p92_p4 = scmp.eq.s32.totalorder %s807_s20, 1 }
   0xa   : > { %s1131_s24 = scalar_select %p73_p1, %s1058_s17, %s75_s22  }
   0xb   : > { %p1133_p5 = por %p86_p2, %p85_p0  ;;  %p1137_p6 = por %p92_p4, %p91_p3 }
   0xc   : > { %p810_p7 = scmp.ge.s32.totalorder %s1062_s18, 1  ;;  %p174_p8 = scmp.lt.s32.totalorder %s1062_s18, 3 }
   0xe   : > { %p175_p9 = pnand %p810_p7, %p174_p8 }
   0xf   : > { %s813_s7 = sshll.u32 (!%p175_p9), %s1116_s19, 4  ;;  %s1199_s14 = sand.u32 (!%p175_p9), 1, %s1054_s16  }
  0x10   : > { %178 = sbr.rel (%p175_p9) target bundleno = 487 (0x1e7), region = 28  ;;  %p211_p10 = scmp.lt.s32.totalorder (!%p175_p9), %s813_s7, 31 }
  0x11   : > { %s811_s27 = sshll.u32 (!%p175_p9), %s1199_s14, 6  ;;  %s1065_s28 = smov (!%p175_p9), 124  }
  0x12   : > { %s1216_s29 = scalar_lea.vmem (!%p175_p9), [#allocation2], %s811_s27  ;;  %s872_s30 = sshll.u32 (!%p175_p9), %s1116_s19, 10 }
  0x13   : > { %s671_s8 = sshll.u32 (!%p175_p9), %s1216_s29, 4  ;;  %s648_s9 = scalar_lea.sflag (!%p175_p9), [#allocation3], %s1199_s14  ;;  %s1278_s8 = int_to_ptr.vmem [resolvable:$true] %s671_s8 }
  0x14   : > { %s1066_s11 = smov (!%p175_p9), [#allocation2]  }
  0x15   : > { %v242_v0 = vld [vmem:[%s1345_s1 + $0x18] sm:$0xff]  ;;  %v241_v1 = vld [vmem:[%s1345_s1 + $0x10] sm:$0xff]  ;;  %v240_v2 = vld [vmem:[%s1345_s1 + $0x8] sm:$0xff]  ;;  %s1356_s7 = smov (!%p211_p10, %s813_s7), 31  ;;  %v1064_v4 = vmov 0.0   ;;  %vm243_vm0 = vcmask 130048  }
  0x16   : > { %320 = vmatprep.subr.mxu0 %v242_v0  ;;  %920 = vmatprep.subr.mxu1 %v242_v0  ;;  %v239_v3 = vld [vmem:[%s1345_s1] sm:$0xff]  ;;  %s814_s10 = sshll.u32 %s1356_s7, 3  ;;  %vm533_vm1 = vcmask 31744   ;;  %s1275_s7 = scalar_lea.hbm %s1346_s2, %s872_s30 }
  0x17   : > { %321 = vmatpush1.msra.mxu0 %v241_v1  ;;  %922 = vmatpush1.msra.mxu1 %v241_v1  ;;  %s1164_s13 = scalar_lea.vmem %s1344_s0, %s814_s10  ;;  %s1206_s23 = scalar_lea.vmem %s1347_s3, %s814_s10 }
  0x18   : > { %322 = vmatprep.subr.mxu0 %v240_v2  ;;  %921 = vmatprep.subr.mxu1 %v240_v2  ;;  %v223_v5 = vld [vmem:[%s1164_s13] sm:$0xff]  ;;  %v224_v7 = vld [vmem:[%s1164_s13 + $0x8] sm:$0xff]  ;;  %v225_v9 = vld [vmem:[%s1164_s13 + $0x10] sm:$0xff]  ;;  %s972_s10 = scalar_lea.vmem %s1278_s8, 1024  ;;  %s976_s12 = sshll.u32 %s1066_s11, 4  ;;  %s977_s12 = int_to_ptr.vmem [resolvable:$false] %s976_s12 }
  0x19   : > { %323 = vmatpush1.msra.mxu0 %v239_v3  ;;  %923 = vmatpush1.msra.mxu1 %v239_v3  ;;  %v231_v6 = vld [vmem:[%s1164_s13 + $0x40] sm:$0xff]  ;;  %v232_v8 = vld [vmem:[%s1164_s13 + $0x48] sm:$0xff]  ;;  %v233_v10 = vld [vmem:[%s1164_s13 + $0x50] sm:$0xff]  ;;  %p973_p11 = scmp.ne.s32.totalorder %s1278_s8, %s972_s10  ;;  %p979_p0 = scmp.lt.s32.totalorder %s1278_s8, %s977_s12 }
  0x1a   : > { %356 = vmatprep.mubr.f32.mxu0 %v1064_v4  ;;  %404 = vmatprep.mubr.f32.mxu1 %v1064_v4  ;;  %v226_v11 = vld [vmem:[%s1164_s13 + $0x18] sm:$0xff]  ;;  %v227_v13 = vld [vmem:[%s1164_s13 + $0x20] sm:$0xff]  ;;  %v228_v15 = vld [vmem:[%s1164_s13 + $0x28] sm:$0xff] }
  0x1b   : > { %817 = vmatmul.mubr.msk.f32.vlgmr.msra.gmra.mxu0 %vm243_vm0, %v223_v5  ;;  %825 = vmatmul.mubr.msk.f32.vlgmr.msra.gmra.mxu1 %vm243_vm0, %v231_v6  ;;  %v234_v12 = vld [vmem:[%s1164_s13 + $0x58] sm:$0xff]  ;;  %v235_v14 = vld [vmem:[%s1164_s13 + $0x60] sm:$0xff]  ;;  %v236_v16 = vld [vmem:[%s1164_s13 + $0x68] sm:$0xff]  ;;  %p974_p12 = pnand %p973_p11, %p1133_p5 }
  0x1c   : > { %362 = vmatprep.mubr.f32.mxu0 %v1064_v4  ;;  %410 = vmatprep.mubr.f32.mxu1 %v1064_v4  ;;  %v229_v17 = vld [vmem:[%s1164_s13 + $0x30] sm:$0xff]  ;;  %v230_v19 = vld [vmem:[%s1164_s13 + $0x38] sm:$0xff] }
  0x1d   : > { %v237_v18 = vld [vmem:[%s1164_s13 + $0x70] sm:$0xff]  ;;  %v238_v20 = vld [vmem:[%s1164_s13 + $0x78] sm:$0xff]  ;;  %p975_p13 = pneg %p974_p12  ;;  %s978_s13 = scalar_lea.vmem %s977_s12, 2048 }
  0x1e   : > { %p980_p1 = scmp.lt.s32.totalorder %s978_s13, %s972_s10 }
  0x1f   : > { %818 = vmatmul.mubr.msk.f32.gmra.mxu0 %vm243_vm0, %v224_v7  ;;  %826 = vmatmul.mubr.msk.f32.gmra.mxu1 %vm243_vm0, %v232_v8 }
  0x20   : > { %368 = vmatprep.mubr.f32.mxu0 %v1064_v4  ;;  %416 = vmatprep.mubr.f32.mxu1 %v1064_v4  ;;  %p981_p2 = por %p980_p1, %p979_p0 }
  0x22   : > { %p982_p3 = pnand %p981_p2, %p975_p13 }
  0x23   : > { %819 = vmatmul.mubr.msk.f32.gmra.mxu0 %vm243_vm0, %v225_v9  ;;  %827 = vmatmul.mubr.msk.f32.gmra.mxu1 %vm243_vm0, %v233_v10 }
  0x24   : > { %374 = vmatprep.mubr.f32.mxu0 %v1064_v4  ;;  %422 = vmatprep.mubr.f32.mxu1 %v1064_v4 }
  0x27   : > { %820 = vmatmul.mubr.msk.f32.gmra.mxu0 %vm243_vm0, %v226_v11  ;;  %828 = vmatmul.mubr.msk.f32.gmra.mxu1 %vm243_vm0, %v234_v12 }
  0x28   : > { %380 = vmatprep.mubr.f32.mxu0 %v1064_v4  ;;  %428 = vmatprep.mubr.f32.mxu1 %v1064_v4 }
  0x2b   : > { %821 = vmatmul.mubr.msk.f32.gmra.mxu0 %vm243_vm0, %v227_v13  ;;  %829 = vmatmul.mubr.msk.f32.gmra.mxu1 %vm243_vm0, %v235_v14 }
  0x2c   : > { %386 = vmatprep.mubr.f32.mxu0 %v1064_v4  ;;  %434 = vmatprep.mubr.f32.mxu1 %v1064_v4 }
  0x2f   : > { %822 = vmatmul.mubr.msk.f32.gmra.mxu0 %vm243_vm0, %v228_v15  ;;  %830 = vmatmul.mubr.msk.f32.gmra.mxu1 %vm243_vm0, %v236_v16 }
  0x30   : > { %392 = vmatprep.mubr.f32.mxu0 %v1064_v4  ;;  %440 = vmatprep.mubr.f32.mxu1 %v1064_v4 }
  0x33   : > { %823 = vmatmul.mubr.msk.f32.gmra.mxu0 %vm243_vm0, %v229_v17  ;;  %831 = vmatmul.mubr.msk.f32.gmra.mxu1 %vm243_vm0, %v237_v18 }
  0x34   : > { %398 = vmatprep.mubr.f32.mxu0 %v1064_v4  ;;  %446 = vmatprep.mubr.f32.mxu1 %v1064_v4 }
  0x37   : > { %824 = vmatmul.mubr.msk.f32.gmra.mxu0 %vm243_vm0, %v230_v19  ;;  %832 = vmatmul.mubr.msk.f32.gmra.mxu1 %vm243_vm0, %v238_v20 }
  0xdb   : > { %v358_v21 = vpop.f32.mrf.mxu0  ;;  %v406_v22 = vpop.f32.mrf.mxu1 }
  0xdd   : > { %v360_v23 = vpop.f32.mrf.mxu0  ;;  %v408_v24 = vpop.f32.mrf.mxu1 }
  0xde   : > { %534 = vst.msk [vmem:[%s1206_s23] sm:$0xff] %vm533_vm1, %v360_v23  ;;  %542 = vst.msk [vmem:[%s1206_s23 + $0x40] sm:$0xff] %vm533_vm1, %v408_v24  ;;  %566 = vrot.lane.b32.xlu0 %v360_v23, %s1065_s28 }
  0xdf   : > { %v364_v25 = vpop.f32.mrf.mxu0  ;;  %v412_v26 = vpop.f32.mrf.mxu1 }
  0xe0   : > { %v876_v27 = vpack.c.bf16 %v364_v25, %v358_v21  ;;  %v896_v28 = vpack.c.bf16 %v412_v26, %v406_v22 }
  0xe1   : > { %v366_v29 = vpop.f32.mrf.mxu0  ;;  %v1214_v30 = vpop.f32.mrf.mxu1 }
  0xe2   : > { %877 = vst [vmem:[%s1216_s29] sm:$0xff] %v876_v27   ;;  %916 = vst [vmem:[%s1216_s29 + $0x20] sm:$0xff] %v896_v28   ;;  %582 = vrot.lane.b32.xlu0 %v408_v24, %s1065_s28 }
  0xe3   : > { %535 = vst.msk [vmem:[%s1206_s23 + $0x8] sm:$0xff] %vm533_vm1, %v366_v29  ;;  %543 = vst.msk [vmem:[%s1206_s23 + $0x48] sm:$0xff] %vm533_vm1, %v1214_v30  ;;  %v370_v31 = vpop.f32.mrf.mxu0  ;;  %v418_v32 = vpop.f32.mrf.mxu1 }
  0xe5   : > { %v372_v33 = vpop.f32.mrf.mxu0  ;;  %v420_v34 = vpop.f32.mrf.mxu1 }
  0xe6   : > { %536 = vst.msk [vmem:[%s1206_s23 + $0x10] sm:$0xff] %vm533_vm1, %v372_v33  ;;  %568 = vrot.lane.b32.xlu0 %v366_v29, %s1065_s28  ;;  %570 = vrot.lane.b32.xlu1 %v372_v33, %s1065_s28  ;;  %544 = vst.msk [vmem:[%s1206_s23 + $0x50] sm:$0xff] %vm533_vm1, %v420_v34 }
  0xe7   : > { %v376_v35 = vpop.f32.mrf.mxu0  ;;  %v424_v36 = vpop.f32.mrf.mxu1 }
  0xe8   : > { %v881_v37 = vpack.c.bf16 %v376_v35, %v370_v31  ;;  %v901_v38 = vpack.c.bf16 %v424_v36, %v418_v32 }
  0xe9   : > { %v378_v39 = vpop.f32.mrf.mxu0  ;;  %v426_v40 = vpop.f32.mrf.mxu1 }
  0xea   : > { %913 = vst [vmem:[%s1216_s29 + $0x8] sm:$0xff] %v881_v37   ;;  %537 = vst.msk [vmem:[%s1206_s23 + $0x18] sm:$0xff] %vm533_vm1, %v378_v39  ;;  %572 = vrot.lane.b32.xlu1 %v378_v39, %s1065_s28 }
  0xeb   : > { %917 = vst [vmem:[%s1216_s29 + $0x28] sm:$0xff] %v901_v38   ;;  %545 = vst.msk [vmem:[%s1206_s23 + $0x58] sm:$0xff] %vm533_vm1, %v426_v40  ;;  %v382_v41 = vpop.f32.mrf.mxu0  ;;  %v430_v42 = vpop.f32.mrf.mxu1 }
  0xed   : > { %v384_v43 = vpop.f32.mrf.mxu0  ;;  %v432_v44 = vpop.f32.mrf.mxu1 }
  0xee   : > { %538 = vst.msk [vmem:[%s1206_s23 + $0x20] sm:$0xff] %vm533_vm1, %v384_v43  ;;  %574 = vrot.lane.b32.xlu0 %v384_v43, %s1065_s28  ;;  %546 = vst.msk [vmem:[%s1206_s23 + $0x60] sm:$0xff] %vm533_vm1, %v432_v44 }
  0xef   : > { %v388_v45 = vpop.f32.mrf.mxu0  ;;  %v436_v46 = vpop.f32.mrf.mxu1 }
  0xf0   : > { %v886_v47 = vpack.c.bf16 %v388_v45, %v382_v41  ;;  %v906_v48 = vpack.c.bf16 %v436_v46, %v430_v42 }
  0xf1   : > { %v390_v49 = vpop.f32.mrf.mxu0  ;;  %v438_v50 = vpop.f32.mrf.mxu1 }
  0xf2   : > { %914 = vst [vmem:[%s1216_s29 + $0x10] sm:$0xff] %v886_v47   ;;  %539 = vst.msk [vmem:[%s1206_s23 + $0x28] sm:$0xff] %vm533_vm1, %v390_v49  ;;  %576 = vrot.lane.b32.xlu1 %v390_v49, %s1065_s28 }
  0xf3   : > { %918 = vst [vmem:[%s1216_s29 + $0x30] sm:$0xff] %v906_v48   ;;  %547 = vst.msk [vmem:[%s1206_s23 + $0x68] sm:$0xff] %vm533_vm1, %v438_v50  ;;  %v394_v51 = vpop.f32.mrf.mxu0  ;;  %v442_v52 = vpop.f32.mrf.mxu1 }
  0xf5   : > { %v396_v53 = vpop.f32.mrf.mxu0  ;;  %v444_v54 = vpop.f32.mrf.mxu1 }
  0xf6   : > { %540 = vst.msk [vmem:[%s1206_s23 + $0x30] sm:$0xff] %vm533_vm1, %v396_v53  ;;  %578 = vrot.lane.b32.xlu0 %v396_v53, %s1065_s28  ;;  %548 = vst.msk [vmem:[%s1206_s23 + $0x70] sm:$0xff] %vm533_vm1, %v444_v54 }
  0xf7   : > { %v400_v55 = vpop.f32.mrf.mxu0  ;;  %v448_v56 = vpop.f32.mrf.mxu1 }
  0xf8   : > { %v891_v57 = vpack.c.bf16 %v400_v55, %v394_v51  ;;  %v911_v58 = vpack.c.bf16 %v448_v56, %v442_v52 }
  0xf9   : > { %v402_v59 = vpop.f32.mrf.mxu0  ;;  %v450_v60 = vpop.f32.mrf.mxu1 }
  0xfa   : > { %915 = vst [vmem:[%s1216_s29 + $0x18] sm:$0xff] %v891_v57   ;;  %541 = vst.msk [vmem:[%s1206_s23 + $0x38] sm:$0xff] %vm533_vm1, %v402_v59  ;;  %580 = vrot.lane.b32.xlu1 %v402_v59, %s1065_s28  ;;  %586 = vrot.lane.b32.xlu0 %v420_v34, %s1065_s28 }
  0xfb   : > { %919 = vst [vmem:[%s1216_s29 + $0x38] sm:$0xff] %v911_v58   ;;  %549 = vst.msk [vmem:[%s1206_s23 + $0x78] sm:$0xff] %vm533_vm1, %v450_v60 }
  0xfe   : > { %584 = vrot.lane.b32.xlu1 %v1214_v30, %s1065_s28  ;;  %590 = vrot.lane.b32.xlu0 %v432_v44, %s1065_s28 }
 0x102   : > { %588 = vrot.lane.b32.xlu1 %v426_v40, %s1065_s28  ;;  %594 = vrot.lane.b32.xlu0 %v444_v54, %s1065_s28 }
 0x106   : > { %592 = vrot.lane.b32.xlu1 %v438_v50, %s1065_s28 }
 0x10a   : > { %596 = vrot.lane.b32.xlu1 %v450_v60, %s1065_s28 }
 0x150   : > { %v567_v61 = vpop.permute.xlu0 %566 }
 0x151   : > { %614 = vxpose.xlu0.b32.start [1/16] (narrow) %v567_v61, 8 }
 0x154   : > { %v583_v62 = vpop.permute.xlu0 %582 }
 0x155   : > { %985 = shalt.err (!%p982_p3)
}
 0x156   : > { %s986_s20 = scalar_lea.hbm %s1275_s7, 1024  ;;  %s990_s27 = scalar_lea.hbm %s1346_s2, 2048 }
 0x157   : > { %p987_p4 = scmp.ne.s32.totalorder %s1275_s7, %s986_s20  ;;  %p991_p9 = scmp.lt.s32.totalorder %s1275_s7, %s1346_s2 }
 0x158   : > { %p992_p10 = scmp.lt.s32.totalorder %s990_s27, %s986_s20 }
 0x159   : > { %p988_p7 = pnand %p987_p4, %p1133_p5 }
 0x15a   : > { %p993_p11 = por %p992_p10, %p991_p9 }
 0x15b   : > { %p989_p8 = pneg %p988_p7 }
 0x15d   : > { %p994_p12 = pnand %p993_p11, %p989_p8 }
 0x15f   : > { %997 = shalt.err (!%p994_p12)
}
 0x160   : > { %s1067_s30 = smov 64   ;;  %s1068_s5 = smov 4   ;;  %v569_v63 = vpop.permute.xlu0 %568  ;;  %v571_v0 = vpop.permute.xlu1 %570 }
 0x161   : > { %924 = dma.vmem_to_hbm [thread:$0]  (%p1133_p5), %s1278_s8, 1024, %s1275_s7, %s648_s9, %s1067_s30, %s1067_s30, %s1068_s5   ;;  %615 = vxpose.xlu0.b32.cont [2/16] (narrow) %v569_v63, 8 }
 0x162   : > { %s812_s6 = sshll.u32 %s1199_s14, 2  ;;  %s853_s9 = sshll.u32 %s1116_s19, 6 }
 0x163   : > { %s209_s7 = scalar_lea.vmem [#allocation4], %s812_s6  ;;  %s689_s12 = scalar_lea.hbm %s1348_s4, %s853_s9 }
 0x164   : > { %v573_v1 = vpop.permute.xlu1 %572  ;;  %v575_v2 = vpop.permute.xlu0 %574  ;;  %s691_s8 = sshll.u32 %s209_s7, 4  ;;  %s658_s13 = scalar_lea.sflag [#allocation5], %s1199_s14  ;;  %s1305_s8 = int_to_ptr.vmem [resolvable:$true] %s691_s8 }
 0x165   : > { %616 = vxpose.xlu0.b32.cont [3/16] (narrow) %v571_v0, 8  ;;  %s998_s20 = scalar_lea.vmem %s1305_s8, 64  ;;  %s1069_s22 = smov [#allocation4]  }
 0x166   : > { %p999_p13 = scmp.ne.s32.totalorder %s1305_s8, %s998_s20  ;;  %s1002_s23 = sshll.u32 %s1069_s22, 4  ;;  %s1003_s23 = int_to_ptr.vmem [resolvable:$false] %s1002_s23 }
 0x167   : > { %s1004_s19 = scalar_lea.vmem %s1003_s23, 128  ;;  %p1005_p2 = scmp.lt.s32.totalorder %s1305_s8, %s1003_s23 }
 0x168   : > { %v577_v3 = vpop.permute.xlu1 %576  ;;  %v579_v4 = vpop.permute.xlu0 %578  ;;  %p1000_p0 = pnand %p999_p13, %p1133_p5  ;;  %p1006_p3 = scmp.lt.s32.totalorder %s1004_s19, %s998_s20 }
 0x169   : > { %617 = vxpose.xlu0.b32.cont [4/16] (narrow) %v573_v1, 8 }
 0x16a   : > { %p1001_p1 = pneg %p1000_p0  ;;  %p1007_p4 = por %p1006_p3, %p1005_p2 }
 0x16c   : > { %v581_v5 = vpop.permute.xlu1 %580  ;;  %v587_v7 = vpop.permute.xlu0 %586  ;;  %p1008_p7 = pnand %p1007_p4, %p1001_p1 }
 0x16d   : > { %618 = vxpose.xlu0.b32.cont [5/16] (narrow) %v575_v2, 8 }
 0x170   : > { %v585_v6 = vpop.permute.xlu1 %584  ;;  %v591_v9 = vpop.permute.xlu0 %590 }
 0x171   : > { %619 = vxpose.xlu0.b32.cont [6/16] (narrow) %v577_v3, 8 }
 0x174   : > { %v589_v8 = vpop.permute.xlu1 %588  ;;  %v595_v11 = vpop.permute.xlu0 %594 }
 0x175   : > { %620 = vxpose.xlu0.b32.cont [7/16] (narrow) %v579_v4, 8 }
 0x178   : > { %v593_v10 = vpop.permute.xlu1 %592 }
 0x179   : > { %621 = vxpose.xlu0.b32.cont [8/16] (narrow) %v581_v5, 8 }
 0x17c   : > { %v597_v12 = vpop.permute.xlu1 %596 }
 0x17d   : > { %622 = vxpose.xlu0.b32.cont [9/16] (narrow) %v583_v62, 8 }
 0x181   : > { %623 = vxpose.xlu0.b32.cont [10/16] (narrow) %v585_v6, 8 }
 0x185   : > { %624 = vxpose.xlu0.b32.cont [11/16] (narrow) %v587_v7, 8 }
 0x189   : > { %625 = vxpose.xlu0.b32.cont [12/16] (narrow) %v589_v8, 8 }
 0x18d   : > { %626 = vxpose.xlu0.b32.cont [13/16] (narrow) %v591_v9, 8 }
 0x191   : > { %627 = vxpose.xlu0.b32.cont [14/16] (narrow) %v593_v10, 8 }
 0x195   : > { %628 = vxpose.xlu0.b32.cont [15/16] (narrow) %v595_v11, 8 }
 0x199   : > { %629 = vxpose.xlu0.b32.end [16/16] (narrow) %v597_v12, 8 }
 0x1d9   : > { %v630_v13 = vpop.trf.xlu0 }
 0x1da   : > { %646 = vst [vmem:[%s209_s7] sm:$0xf] %v630_v13 }
 0x1db   : > { %1011 = shalt.err (!%p1008_p7)
}
 0x1dc   : > { %s1012_s27 = scalar_lea.hbm %s689_s12, 64  ;;  %s1016_s29 = scalar_lea.hbm %s1348_s4, 128 }
 0x1dd   : > { %p1013_p8 = scmp.ne.s32.totalorder %s689_s12, %s1012_s27  ;;  %p1017_p11 = scmp.lt.s32.totalorder %s689_s12, %s1348_s4 }
 0x1de   : > { %p1018_p12 = scmp.lt.s32.totalorder %s1016_s29, %s1012_s27 }
 0x1df   : > { %p1014_p9 = pnand %p1013_p8, %p1133_p5 }
 0x1e0   : > { %p1019_p13 = por %p1018_p12, %p1017_p11 }
 0x1e1   : > { %p1015_p10 = pneg %p1014_p9 }
 0x1e3   : > { %p1020_p0 = pnand %p1019_p13, %p1015_p10 }
 0x1e5   : > { %1023 = shalt.err (!%p1020_p0)
}
 0x1e6   : > { %925 = dma.vmem_to_hbm [thread:$0]  (%p1133_p5), %s1305_s8, 64, %s689_s12, %s658_s13  }
 0x1e7 PF: > { %p935_p1 = scmp.ge.s32.totalorder %s1062_s18, 2  ;;  %s703_s6 = sand.u32 1, %s1050_s15  }
 0x1e8   : > { %s704_s7 = scalar_lea.sflag [#allocation3], %s703_s6 }
 0x1e9   : > { %p929_p2 = pnand %p935_p1, %p1137_p6 }
 0x1eb   : > { %p930_p3 = pneg %p929_p2 }
 0x1ed   : > { %1041 = dma.done.wait (%p930_p3), %s704_s7, 1024  }
 0x1ee   : > { %1043 = vsyncadd (%p930_p3), %s704_s7, 4294966272  ;;  %s721_s9 = scalar_lea.sflag [#allocation5], %s703_s6 }
 0x1ef   : > { %1045 = dma.done.wait (%p930_p3), %s721_s9, 64  }
 0x1f0   : > { %1047 = vsyncadd (%p930_p3), %s721_s9, 4294967232  ;;  %p18_p5 = scmp.ge.s32.totalorder %s1120_s21, 4   ;;  %s1351_s15 = smov %s1054_s16 }
 0x1f1   : > { %s1352_s16 = smov %s1058_s17  ;;  %s1353_s17 = smov %s1131_s24 }
 0x1f2   : > { %s1354_s18 = smov %s1120_s21  ;;  %20 = sbr.rel (!%p18_p5) target bundleno = 5 (0x5), region = 92 }
 0x1f7   :  { %726 = vsyncpa [#allocation3], 1 }
 0x1f8   :  { %728 = vsyncpa [#allocation3 + $0x1], 1 }
 0x1f9   :  { %729 = vsyncpa [#allocation5], 1 }
 0x1fa   :  { %731 = vsyncpa [#allocation5 + $0x1], 1 }

</bundles_post_ra>
